<compile_context>
chip_gen: v7x
topology: tpu7x:2x2x1
jax: 0.10.0
libtpu: 0.0.40
codegen_flags: <defaults>
</compile_context>

<pallas_src>
import jax
import jax.numpy as jnp
from jax.experimental import pallas as pl
from jax.experimental.pallas import tpu as pltpu


def critic_kernel(x_ref, w1_ref, b1_ref, w2_ref, b2_ref, w3_ref, b3_ref, o_ref):
    # x_ref : (1, 1, TM)  lane-dense tile of TM scalar inputs
    # w1_ref: (H, 1)   b1_ref: (H, 1)        fc_1  (PyTorch (out, in) layout)
    # w2_ref: (H, H)   b2_ref: (H, 1)        fc_2  (PyTorch (out, in) layout)
    # w3_ref: (H, 1)   b3_ref: (1, 1) SMEM   fc_3  (weight stored as a column)
    # o_ref : (1, 1, TM)
    x = x_ref[0]                                                      # (1, TM)

    # fc_1 + ReLU: K=1 outer product -> pure VPU broadcast, keep the MXU clean.
    h1 = jnp.maximum(w1_ref[...] * x + b1_ref[...], 0.0)             # (H, TM)

    # fc_2 + ReLU: the only real matmul -> MXU, f32 accumulation.
    h2 = jnp.dot(w2_ref[...], h1, preferred_element_type=jnp.float32)
    h2 = jnp.maximum(h2 + b2_ref[...], 0.0)                          # (H, TM)

    # fc_3 + sigmoid: N=1 -> VPU multiply + cross-sublane (XLU) reduce, no MXU.
    z = jnp.sum(w3_ref[...] * h2, axis=0, keepdims=True) + b3_ref[0, 0]  # (1, TM)
    o_ref[0] = jax.nn.sigmoid(z).astype(o_ref.dtype)


def critic_forward(x, params, *, tile_m=1024):
    """x: (B, 1) f32.  params in PyTorch (out, in) layout (w3 as a column)."""
    w1, b1, w2, b2, w3, b3 = params
    H = w1.shape[0]
    B = x.shape[0]

    # Lane-dense batch tile: multiple of 128, no larger than the (padded) batch.
    tile_m = max(128, (tile_m // 128) * 128)
    tm = min(tile_m, pl.cdiv(B, 128) * 128)
    n_tiles = pl.cdiv(B, tm)
    Bp = n_tiles * tm

    xf = x.reshape(-1).astype(jnp.float32)
    if Bp != B:
        xf = jnp.pad(xf, (0, Bp - B))
    x_lane = xf.reshape(n_tiles, 1, tm)          # samples on the lane axis

    const2d = lambda i: (0, 0)                   # weights stay VMEM-resident
    out = pl.pallas_call(
        critic_kernel,
        out_shape=jax.ShapeDtypeStruct((n_tiles, 1, tm), jnp.float32),
        grid=(n_tiles,),
        in_specs=[
            pl.BlockSpec((1, 1, tm), lambda i: (i, 0, 0)),            # x tile
            pl.BlockSpec((H, 1), const2d),                            # w1
            pl.BlockSpec((H, 1), const2d),                            # b1
            pl.BlockSpec((H, H), const2d),                            # w2
            pl.BlockSpec((H, 1), const2d),                            # b2
            pl.BlockSpec((H, 1), const2d),                            # w3 (column)
            pl.BlockSpec(memory_space=pltpu.MemorySpace.SMEM),        # b3 scalar
        ],
        out_specs=pl.BlockSpec((1, 1, tm), lambda i: (i, 0, 0)),
        compiler_params=pltpu.CompilerParams(
            dimension_semantics=("parallel",),
        ),
    )(x_lane, w1, b1, w2, b2, w3, b3)

    return out.reshape(Bp, 1)[:B]


def critic_reference(x, params):
    """Pure-JAX reference with identical semantics to the PyTorch module."""
    w1, b1, w2, b2, w3, b3 = params
    h1 = jnp.maximum(x @ w1.T + b1.T, 0.0)
    h2 = jnp.maximum(h1 @ w2.T + b2.T, 0.0)
    return jax.nn.sigmoid(h2 @ w3 + b3)


def init_params(key, num_hidden):
    """Deterministic synthetic parameters, PyTorch (out, in) layout.
    fc_3's (1, H) weight is stored transposed as a (H, 1) column."""
    ks = jax.random.split(key, 6)
    s = 0.1
    w1 = s * jax.random.normal(ks[0], (num_hidden, 1), jnp.float32)
    b1 = s * jax.random.normal(ks[1], (num_hidden, 1), jnp.float32)
    w2 = s * jax.random.normal(ks[2], (num_hidden, num_hidden), jnp.float32)
    b2 = s * jax.random.normal(ks[3], (num_hidden, 1), jnp.float32)
    w3 = s * jax.random.normal(ks[4], (num_hidden, 1), jnp.float32)
    b3 = s * jax.random.normal(ks[5], (1, 1), jnp.float32)
    return (w1, b1, w2, b2, w3, b3)


if __name__ == "__main__":
    key = jax.random.PRNGKey(0)
    k_x, k_p = jax.random.split(key)

    batch = 600          # not a multiple of the tile: exercises grid + padding
    num_hidden = 32
    tile_m = 256

    x = jax.random.normal(k_x, (batch, 1), jnp.float32)
    params = init_params(k_p, num_hidden)

    out = critic_forward(x, params, tile_m=tile_m)
    out = jax.block_until_ready(out)

    ref = critic_reference(x, params)

    assert out.shape == (batch, 1)
    assert bool(jnp.all((out >= 0.0) & (out <= 1.0)))
    assert bool(jnp.allclose(out, ref, rtol=1e-5, atol=1e-5))

    print("KERNEL_OK")
</pallas_src>

<mosaic_0001>
module attributes {stable_mosaic.version = 11 : i64} {
  func.func @critic_kernel(%arg0: i32, %arg1: memref<1x1x256xf32, #tpu.memory_space<vmem>>, %arg2: memref<32x1xf32, #tpu.memory_space<vmem>>, %arg3: memref<32x1xf32, #tpu.memory_space<vmem>>, %arg4: memref<32x32xf32, #tpu.memory_space<vmem>>, %arg5: memref<32x1xf32, #tpu.memory_space<vmem>>, %arg6: memref<32x1xf32, #tpu.memory_space<vmem>>, %arg7: memref<1x1xf32, #tpu.memory_space<smem>>, %arg8: memref<1x1x256xf32, #tpu.memory_space<vmem>>) attributes {dimension_semantics = [#tpu.dimension_semantics<parallel>], iteration_bounds = array<i64: 3>, scalar_prefetch = 0 : i64, scratch_operands = 0 : i64, tpu.core_type = #tpu.core_type<tc>, window_params = [{transform_indices = @transform_0, window_bounds = array<i64: 1, 1, 256>}, {pipeline_mode = #tpu.pipeline_mode<synchronous>, transform_indices = @transform_1, window_bounds = array<i64: 32, 1>}, {pipeline_mode = #tpu.pipeline_mode<synchronous>, transform_indices = @transform_2, window_bounds = array<i64: 32, 1>}, {pipeline_mode = #tpu.pipeline_mode<synchronous>, transform_indices = @transform_3, window_bounds = array<i64: 32, 32>}, {pipeline_mode = #tpu.pipeline_mode<synchronous>, transform_indices = @transform_4, window_bounds = array<i64: 32, 1>}, {pipeline_mode = #tpu.pipeline_mode<synchronous>, transform_indices = @transform_5, window_bounds = array<i64: 32, 1>}, {transform_indices = @transform_6, window_bounds = array<i64: 1, 1>}, {transform_indices = @transform_7, window_bounds = array<i64: 1, 1, 256>}]} {
    %c0 = arith.constant 0 : index
    %c0_0 = arith.constant 0 : index
    %c0_1 = arith.constant 0 : index
    %0 = vector.load %arg1[%c0, %c0_0, %c0_1] : memref<1x1x256xf32, #tpu.memory_space<vmem>>, vector<1x1x256xf32>
    %1 = vector.shape_cast %0 : vector<1x1x256xf32> to vector<1x256xf32>
    %c0_2 = arith.constant 0 : index
    %c0_3 = arith.constant 0 : index
    %2 = vector.load %arg2[%c0_2, %c0_3] : memref<32x1xf32, #tpu.memory_space<vmem>>, vector<32x1xf32>
    %3 = vector.broadcast %2 : vector<32x1xf32> to vector<32x256xf32>
    %4 = vector.broadcast %1 : vector<1x256xf32> to vector<32x256xf32>
    %5 = arith.mulf %3, %4 : vector<32x256xf32>
    %c0_4 = arith.constant 0 : index
    %c0_5 = arith.constant 0 : index
    %6 = vector.load %arg3[%c0_4, %c0_5] : memref<32x1xf32, #tpu.memory_space<vmem>>, vector<32x1xf32>
    %7 = vector.broadcast %6 : vector<32x1xf32> to vector<32x256xf32>
    %8 = arith.addf %5, %7 : vector<32x256xf32>
    %cst = arith.constant 0.000000e+00 : f32
    %9 = vector.broadcast %cst : f32 to vector<32x256xf32>
    %10 = arith.maximumf %8, %9 : vector<32x256xf32>
    %c0_6 = arith.constant 0 : index
    %c0_7 = arith.constant 0 : index
    %11 = vector.load %arg4[%c0_6, %c0_7] : memref<32x32xf32, #tpu.memory_space<vmem>>, vector<32x32xf32>
    %cst_8 = arith.constant dense<0.000000e+00> : vector<32x256xf32>
    %12 = tpu.matmul %11, %10, %cst_8 {dimension_numbers = #tpu.dot_dimension_numbers<[1], [0], [0], [1], [0, 0, 1, 1], [], []>} : vector<32x32xf32>, vector<32x256xf32>, vector<32x256xf32> -> vector<32x256xf32>
    %c0_9 = arith.constant 0 : index
    %c0_10 = arith.constant 0 : index
    %13 = vector.load %arg5[%c0_9, %c0_10] : memref<32x1xf32, #tpu.memory_space<vmem>>, vector<32x1xf32>
    %14 = vector.broadcast %13 : vector<32x1xf32> to vector<32x256xf32>
    %15 = arith.addf %12, %14 : vector<32x256xf32>
    %cst_11 = arith.constant 0.000000e+00 : f32
    %16 = vector.broadcast %cst_11 : f32 to vector<32x256xf32>
    %17 = arith.maximumf %15, %16 : vector<32x256xf32>
    %c0_12 = arith.constant 0 : index
    %c0_13 = arith.constant 0 : index
    %18 = vector.load %arg6[%c0_12, %c0_13] : memref<32x1xf32, #tpu.memory_space<vmem>>, vector<32x1xf32>
    %19 = vector.broadcast %18 : vector<32x1xf32> to vector<32x256xf32>
    %20 = arith.mulf %19, %17 : vector<32x256xf32>
    %cst_14 = arith.constant dense<0.000000e+00> : vector<256xf32>
    %21 = vector.multi_reduction <add>, %20, %cst_14 [0] : vector<32x256xf32> to vector<256xf32>
    %22 = vector.shape_cast %21 : vector<256xf32> to vector<1x256xf32>
    %c0_15 = arith.constant 0 : index
    %c0_16 = arith.constant 0 : index
    %23 = memref.load %arg7[%c0_15, %c0_16] : memref<1x1xf32, #tpu.memory_space<smem>>
    %24 = vector.broadcast %23 : f32 to vector<1x256xf32>
    %25 = arith.addf %22, %24 : vector<1x256xf32>
    %26 = arith.negf %25 : vector<1x256xf32>
    %27 = math.exp %26 : vector<1x256xf32>
    %cst_17 = arith.constant 1.000000e+00 : f32
    %28 = vector.broadcast %cst_17 : f32 to vector<1x256xf32>
    %29 = arith.addf %28, %27 : vector<1x256xf32>
    %30 = arith.divf %28, %29 : vector<1x256xf32>
    %c0_18 = arith.constant 0 : index
    %c0_19 = arith.constant 0 : index
    %c0_20 = arith.constant 0 : index
    %31 = vector.load %arg8[%c0_18, %c0_19, %c0_20] : memref<1x1x256xf32, #tpu.memory_space<vmem>>, vector<1x1x256xf32>
    %32 = vector.shape_cast %31 : vector<1x1x256xf32> to vector<1x256xf32>
    %33 = vector.shape_cast %30 : vector<1x256xf32> to vector<1x1x256xf32>
    tpu.vector_store %arg8[%c0_18, %c0_19, %c0_20], %33 {strides = array<i32>} : memref<1x1x256xf32, #tpu.memory_space<vmem>>, vector<1x1x256xf32>,
    return
  }
  func.func @transform_0(%arg0: i32) -> (i32, i32, i32) {
    %c0_i32 = arith.constant 0 : i32
    %c0_i32_0 = arith.constant 0 : i32
    %c0_i32_1 = arith.constant 0 : i32
    return %arg0, %c0_i32, %c0_i32_0 : i32, i32, i32
  }
  func.func @transform_1(%arg0: i32) -> (i32, i32) {
    %c0_i32 = arith.constant 0 : i32
    %c0_i32_0 = arith.constant 0 : i32
    %c0_i32_1 = arith.constant 0 : i32
    return %c0_i32, %c0_i32_0 : i32, i32
  }
  func.func @transform_2(%arg0: i32) -> (i32, i32) {
    %c0_i32 = arith.constant 0 : i32
    %c0_i32_0 = arith.constant 0 : i32
    %c0_i32_1 = arith.constant 0 : i32
    return %c0_i32, %c0_i32_0 : i32, i32
  }
  func.func @transform_3(%arg0: i32) -> (i32, i32) {
    %c0_i32 = arith.constant 0 : i32
    %c0_i32_0 = arith.constant 0 : i32
    %c0_i32_1 = arith.constant 0 : i32
    return %c0_i32, %c0_i32_0 : i32, i32
  }
  func.func @transform_4(%arg0: i32) -> (i32, i32) {
    %c0_i32 = arith.constant 0 : i32
    %c0_i32_0 = arith.constant 0 : i32
    %c0_i32_1 = arith.constant 0 : i32
    return %c0_i32, %c0_i32_0 : i32, i32
  }
  func.func @transform_5(%arg0: i32) -> (i32, i32) {
    %c0_i32 = arith.constant 0 : i32
    %c0_i32_0 = arith.constant 0 : i32
    %c0_i32_1 = arith.constant 0 : i32
    return %c0_i32, %c0_i32_0 : i32, i32
  }
  func.func @transform_6(%arg0: i32) -> (i32, i32) {
    %c0_i32 = arith.constant 0 : i32
    %c0_i32_0 = arith.constant 0 : i32
    %c0_i32_1 = arith.constant 0 : i32
    return %c0_i32, %c0_i32_0 : i32, i32
  }
  func.func @transform_7(%arg0: i32) -> (i32, i32, i32) {
    %c0_i32 = arith.constant 0 : i32
    %c0_i32_0 = arith.constant 0 : i32
    %c0_i32_1 = arith.constant 0 : i32
    return %arg0, %c0_i32, %c0_i32_0 : i32, i32, i32
  }
}

</mosaic_0001>

<bundles_post_ra>
// kernel: tpu_custom_call.1
= control target key start
LH: loop header
LB: loop body
LE: loop exit
PB: predicated region body
PF: predicated region fallthrough
CT: control target
= control target key end

     0   :  { %s1024_s0 = inlined_call_operand.vmem [shape: f32[3,1,256], index: 0, kind: input, shape index: {}]   ;;  %s1025_s1 = inlined_call_operand.vmem [shape: f32[32,1], index: 1, kind: input, shape index: {}]   ;;  %s1026_s2 = inlined_call_operand.vmem [shape: f32[32,1], index: 2, kind: input, shape index: {}]   ;;  %s1027_s3 = inlined_call_operand.vmem [shape: f32[32,32], index: 3, kind: input, shape index: {}]   ;;  %s1028_s4 = inlined_call_operand.vmem [shape: f32[32,1], index: 4, kind: input, shape index: {}]   ;;  %s1029_s5 = inlined_call_operand.vmem [shape: f32[32,1], index: 5, kind: input, shape index: {}]   ;;  %s1030_s6 = inlined_call_operand.<no memory space> [shape: f32[1,1], index: 6, kind: input, shape index: {}]   ;;  %s1031_s7 = inlined_call_operand.hbm [shape: f32[3,1,256], index: 7, kind: output, shape index: {}]  }
   0x1   :  { %12 = sst [smem:[#allocation2]] %s1030_s6 }
   0x2   :  { %13 = vsyncpa [#allocation4], 0 }
   0x3   :  { %15 = vsyncpa [#allocation4 + $0x1], 0  ;;  %s853_s26 = smov 0   ;;  %s855_s27 = smov 0  }
   0x4   :  { %s857_s28 = smov 0   ;;  %s859_s29 = smov 0  }
   0x5 LB: > { %s874_s6 = sadd.s32 4294967295, %s804_s29   ;;  %s660_s30 = sadd.s32 4294967294, %s804_s29   ;;  %s804_s29 = sphi %s859_s29, %s1037_s29   ;;  %s800_s28 = sphi %s857_s28, %s1036_s28   ;;  %s796_s27 = sphi %s855_s27, %s1035_s27   ;;  %s792_s26 = sphi %s853_s26, %s1034_s26  }
   0x6   : > { %s878_s8 = sadd.s32 1, %s804_s29   ;;  %s180_s9 = sadd.s32 1, %s800_s28 }
   0x7   : > { %s177_s10 = ssub.s32 %s804_s29, %s878_s8  ;;  %p190_p0 = scmp.ne.s32.totalorder %s800_s28, %s796_s27 }
   0x8   : > { %p178_p1 = scmp.eq.s32.totalorder %s177_s10, 0  ;;  %p191_p2 = scmp.eq.s32.totalorder %s874_s6, 2 }
   0x9   : > { %p196_p3 = scmp.ne.s32.totalorder %s796_s27, %s792_s26  ;;  %p197_p4 = scmp.eq.s32.totalorder %s660_s30, 2 }
   0xa   : > { %s889_s11 = scalar_select %p178_p1, %s800_s28, %s180_s9  }
   0xb   : > { %p891_p5 = por %p191_p2, %p190_p0  ;;  %p895_p6 = por %p197_p4, %p196_p3 }
   0xc   : > { %p663_p7 = scmp.ge.s32.totalorder %s804_s29, 1  ;;  %p240_p8 = scmp.lt.s32.totalorder %s804_s29, 4 }
   0xe   : > { %p241_p9 = pnand %p663_p7, %p240_p8 }
   0xf   : > { %v319_v0 = vld [vmem:[%s1026_s2] sm:$0xff] (!%p241_p9)  ;;  %v806_v2 = vmov (!%p241_p9), 0   ;;  %v320_v3 = vld [vmem:[%s1026_s2 + $0x8] sm:$0xff] (!%p241_p9)  ;;  %v279_v5 = vld [vmem:[%s1025_s1 + $0x18] sm:$0xff] (!%p241_p9)  ;;  %v807_v15 = vmov (!%p241_p9), 0.0   ;;  %p271_p10 = scmp.lt.s32.totalorder (!%p241_p9), %s874_s6, 2  ;;  %v301_v18 = vlaneseq (!%p241_p9) }
  0x10   : > { %244 = sbr.rel (%p241_p9) target bundleno = 456 (0x1c8), region = 48  ;;  %v276_v1 = vld [vmem:[%s1025_s1] sm:$0xff] (!%p241_p9)  ;;  %733 = vset.pattern.permute.xlu1 (!%p241_p9), %v806_v2  ;;  %732 = vset.pattern.permute.xlu0 (!%p241_p9), %v806_v2  ;;  %v277_v4 = vld [vmem:[%s1025_s1 + $0x8] sm:$0xff] (!%p241_p9)  ;;  %v278_v6 = vld [vmem:[%s1025_s1 + $0x10] sm:$0xff] (!%p241_p9)  ;;  %vm387_vm0 = vcmask (!%p241_p9), 261120   ;;  %s547_s14 = sld [smem:[#allocation2]] (!%p241_p9) }
  0x11   : > { %325 = vperm.xlu1 (!%p241_p9), %733, %v319_v0   ;;  %282 = vperm.xlu0 (!%p241_p9), %732, %v276_v1   ;;  %v322_v7 = vld [vmem:[%s1026_s2 + $0x18] sm:$0xff] (!%p241_p9)  ;;  %v321_v8 = vld [vmem:[%s1026_s2 + $0x10] sm:$0xff] (!%p241_p9)  ;;  %v364_v9 = vld [vmem:[%s1028_s4 + $0x8] sm:$0xff] (!%p241_p9)  ;;  %v954_v19 = vshrl.u32 (!%p241_p9), %v301_v18, 7  ;;  %s268_s15 = sand.u32 (!%p241_p9), 1, %s796_s27   ;;  %vm583_vm1 = vcmp.lt.s32.totalorder (!%p241_p9), %v301_v18, 256 }
  0x12   : > { %v363_v10 = vld [vmem:[%s1028_s4] sm:$0xff] (!%p241_p9)  ;;  %v366_v11 = vld [vmem:[%s1028_s4 + $0x18] sm:$0xff] (!%p241_p9)  ;;  %v365_v12 = vld [vmem:[%s1028_s4 + $0x10] sm:$0xff] (!%p241_p9)  ;;  %464 = vmatprep.mubr.f32.mxu0 (!%p241_p9), %v807_v15  ;;  %476 = vmatprep.mubr.f32.mxu1 (!%p241_p9), %v807_v15  ;;  %s587_s23 = scalar_lea.sflag (!%p241_p9), [#allocation4], %s268_s15 }
  0x13   : > { %v498_v13 = vld [vmem:[%s1029_s5 + $0x8] sm:$0xff] (!%p241_p9)  ;;  %v497_v14 = vld [vmem:[%s1029_s5] sm:$0xff] (!%p241_p9)  ;;  %v500_v16 = vld [vmem:[%s1029_s5 + $0x18] sm:$0xff] (!%p241_p9)  ;;  %v303_v20 = vsub.s32 (!%p241_p9), 0, %v954_v19  ;;  %v307_v21 = vsub.s32 (!%p241_p9), 1, %v954_v19 }
  0x14   : > { %v499_v17 = vld [vmem:[%s1029_s5 + $0x10] sm:$0xff] (!%p241_p9)  ;;  %v359_v61 = vld [vmem:[%s1027_s3] sm:$0xff] (!%p241_p9)  ;;  %v360_v63 = vld [vmem:[%s1027_s3 + $0x8] sm:$0xff] (!%p241_p9) }
  0x15   : > { %330 = vperm.xlu1 (!%p241_p9), %733, %v320_v3   ;;  %287 = vperm.xlu0 (!%p241_p9), %732, %v277_v4   ;;  %v361_v62 = vld [vmem:[%s1027_s3 + $0x10] sm:$0xff] (!%p241_p9)  ;;  %v362_v0 = vld [vmem:[%s1027_s3 + $0x18] sm:$0xff] (!%p241_p9) }
  0x17   : > { %s272_s16 = scalar_select %p271_p10, %s874_s6, 2 }
  0x19   : > { %297 = vperm.xlu1 %733, %v279_v5   ;;  %292 = vperm.xlu0 %732, %v278_v6   ;;  %s665_s17 = sshll.u32 %s272_s16, 1  ;;  %s664_s16 = sshll.u32 %s268_s15, 1 }
  0x1a   : > { %s274_s20 = scalar_lea.vmem %s1024_s0, %s665_s17  ;;  %s677_s17 = sshll.u32 %s874_s6, 5 }
  0x1b   : > { %v275_v22 = vld [vmem:[%s274_s20] sm:$0x3]  ;;  %s270_s18 = scalar_lea.vmem [#allocation3], %s664_s16  ;;  %s982_s22 = scalar_lea.hbm %s1031_s7, %s677_s17 }
  0x1c   : > { %v304_v23 = vrot.slane %v275_v22, %v303_v20  ;;  %v308_v24 = vrot.slane %v275_v22, %v307_v21  ;;  %s601_s19 = sshll.u32 %s270_s18, 4  ;;  %s809_s6 = smov [#allocation3]   ;;  %s984_s19 = int_to_ptr.vmem [resolvable:$true] %s601_s19 }
  0x1d   : > { %340 = vperm.xlu1 %733, %v322_v7   ;;  %335 = vperm.xlu0 %732, %v321_v8   ;;  %s742_s24 = scalar_lea.vmem %s984_s19, 32  ;;  %s746_s25 = sshll.u32 %s809_s6, 4  ;;  %s747_s25 = int_to_ptr.vmem [resolvable:$false] %s746_s25 }
  0x1e   : > { %p743_p11 = scmp.ne.s32.totalorder %s984_s19, %s742_s24  ;;  %s748_s30 = scalar_lea.vmem %s747_s25, 64 }
  0x1f   : > { %p749_p0 = scmp.lt.s32.totalorder %s984_s19, %s747_s25  ;;  %p750_p1 = scmp.lt.s32.totalorder %s748_s30, %s742_s24 }
  0x20   : > { %p744_p12 = pnand %p743_p11, %p891_p5 }
  0x21   : > { %374 = vperm.xlu1 %733, %v364_v9   ;;  %369 = vperm.xlu0 %732, %v363_v10   ;;  %p751_p2 = por %p750_p1, %p749_p0 }
  0x22   : > { %p745_p13 = pneg %p744_p12 }
  0x24   : > { %p752_p3 = pnand %p751_p2, %p745_p13 }
  0x25   : > { %384 = vperm.xlu1 %733, %v366_v11   ;;  %379 = vperm.xlu0 %732, %v365_v12  }
  0x29   : > { %508 = vperm.xlu1 %733, %v498_v13   ;;  %503 = vperm.xlu0 %732, %v497_v14  }
  0x2d   : > { %518 = vperm.xlu1 %733, %v500_v16   ;;  %513 = vperm.xlu0 %732, %v499_v17  }
  0x90   : > { %v326_v25 = vpop.permute.xlu1 %325  ;;  %v283_v26 = vpop.permute.xlu0 %282 }
  0x91   : > { %v311_v27 = vmul.f32 %v304_v23, %v283_v26  ;;  %v312_v28 = vmul.f32 %v308_v24, %v283_v26 }
  0x93   : > { %v343_v33 = vadd.f32 %v326_v25, %v311_v27  ;;  %v344_v34 = vadd.f32 %v326_v25, %v312_v28 }
  0x94   : > { %v331_v29 = vpop.permute.xlu1 %330  ;;  %v288_v30 = vpop.permute.xlu0 %287 }
  0x95   : > { %v313_v31 = vmul.f32 %v304_v23, %v288_v30  ;;  %v314_v32 = vmul.f32 %v308_v24, %v288_v30  ;;  %v352_v39 = vmax.f32 %v344_v34, 0.0  ;;  %v351_v41 = vmax.f32 %v343_v33, 0.0 }
  0x97   : > { %v345_v35 = vadd.f32 %v331_v29, %v313_v31  ;;  %v346_v36 = vadd.f32 %v331_v29, %v314_v32 }
  0x98   : > { %v298_v37 = vpop.permute.xlu1 %297  ;;  %v293_v38 = vpop.permute.xlu0 %292 }
  0x99   : > { %v354_v40 = vmax.f32 %v346_v36, 0.0  ;;  %v353_v42 = vmax.f32 %v345_v35, 0.0  ;;  %v317_v43 = vmul.f32 %v304_v23, %v298_v37  ;;  %v318_v44 = vmul.f32 %v308_v24, %v298_v37 }
  0x9a   : > { %v315_v45 = vmul.f32 %v304_v23, %v293_v38  ;;  %v316_v46 = vmul.f32 %v308_v24, %v293_v38 }
  0x9b   : > { %v678_v49 = vpack.c.bf16 %v354_v40, %v352_v39  ;;  %v680_v50 = vpack.c.bf16 %v353_v42, %v351_v41 }
  0x9c   : > { %v341_v47 = vpop.permute.xlu1 %340  ;;  %v336_v48 = vpop.permute.xlu0 %335 }
  0x9d   : > { %v349_v51 = vadd.f32 %v341_v47, %v317_v43  ;;  %v350_v52 = vadd.f32 %v341_v47, %v318_v44  ;;  %v347_v53 = vadd.f32 %v336_v48, %v315_v45  ;;  %v348_v54 = vadd.f32 %v336_v48, %v316_v46  ;;  %679 = vmatprep.subr.bf16.mxu0 %v678_v49 }
  0x9e   : > { %686 = vmatprep.subr.bf16.mxu1 %v678_v49  ;;  %681 = vmatpush1.bf16.msra.mxu0 %v680_v50 }
  0x9f   : > { %v357_v55 = vmax.f32 %v349_v51, 0.0  ;;  %v358_v56 = vmax.f32 %v350_v52, 0.0  ;;  %v355_v57 = vmax.f32 %v347_v53, 0.0  ;;  %v356_v58 = vmax.f32 %v348_v54, 0.0  ;;  %688 = vmatpush1.bf16.msra.mxu1 %v680_v50 }
  0xa0   : > { %v370_v1 = vpop.permute.xlu0 %369  ;;  %v375_v2 = vpop.permute.xlu1 %374 }
  0xa1   : > { %v682_v59 = vpack.c.bf16 %v358_v56, %v356_v58  ;;  %v684_v60 = vpack.c.bf16 %v357_v55, %v355_v57  ;;  %v548_v58 = vstv %s547_s14 }
  0xa3   : > { %683 = vmatprep.subr.bf16.mxu0 %v682_v59  ;;  %687 = vmatprep.subr.bf16.mxu1 %v682_v59 }
  0xa4   : > { %685 = vmatpush1.bf16.msra.mxu0 %v684_v60  ;;  %689 = vmatpush1.bf16.msra.mxu1 %v684_v60  ;;  %v380_v3 = vpop.permute.xlu0 %379  ;;  %v385_v4 = vpop.permute.xlu1 %384 }
  0xa7   : > { %666 = vmatmul.mubr.msk.f32.vlgmr.msra.gmra.mrb[0].mxu0 %vm387_vm0, %v359_v61  ;;  %668 = vmatmul.mubr.msk.f32.vlgmr.msra.gmra.mrb[0].mxu1 %vm387_vm0, %v361_v62 }
  0xa8   : > { %470 = vmatprep.mubr.f32.mxu0 %v807_v15  ;;  %482 = vmatprep.mubr.f32.mxu1 %v807_v15  ;;  %v504_v11 = vpop.permute.xlu0 %503  ;;  %v509_v23 = vpop.permute.xlu1 %508 }
  0xab   : > { %667 = vmatmul.mubr.msk.f32.gmra.mrb[2].mxu0 %vm387_vm0, %v360_v63  ;;  %669 = vmatmul.mubr.msk.f32.gmra.mrb[2].mxu1 %vm387_vm0, %v362_v0 }
  0xac   : > { %v514_v34 = vpop.permute.xlu0 %513  ;;  %v519_v40 = vpop.permute.xlu1 %518 }
 0x17a   : > { %v466_v5 = vpop.f32.mrb[0].mxu0  ;;  %v478_v6 = vpop.f32.mrb[0].mxu1 }
 0x17b   : > { %v467_v7 = vadd.f32 %v466_v5, %v370_v1  ;;  %v468_v8 = vpop.f32.mrb[1].mxu0  ;;  %v480_v9 = vpop.f32.mrb[1].mxu1  ;;  %v479_v12 = vadd.f32 %v478_v6, %v380_v3  ;;  %v808_v6 = vmov 1966171168  }
 0x17c   : > { %v469_v10 = vadd.f32 %v468_v8, %v370_v1  ;;  %v481_v13 = vadd.f32 %v480_v9, %v380_v3 }
 0x17d   : > { %v489_v16 = vmax.f32 %v467_v7, 0.0  ;;  %v493_v27 = vmax.f32 %v479_v12, 0.0  ;;  %v567_v7 = vunpack.c.l.s4 %v808_v6 }
 0x17e   : > { %v472_v14 = vpop.f32.mrb[2].mxu0  ;;  %v484_v15 = vpop.f32.mrb[2].mxu1  ;;  %v490_v24 = vmax.f32 %v469_v10, 0.0  ;;  %v494_v29 = vmax.f32 %v481_v13, 0.0 }
 0x17f   : > { %v473_v17 = vadd.f32 %v472_v14, %v375_v2  ;;  %v485_v20 = vadd.f32 %v484_v15, %v385_v4  ;;  %v474_v21 = vpop.f32.mrb[3].mxu0  ;;  %v486_v22 = vpop.f32.mrb[3].mxu1  ;;  %v521_v31 = vmul.f32 %v504_v11, %v489_v16  ;;  %v525_v38 = vmul.f32 %v514_v34, %v493_v27 }
 0x180   : > { %v475_v25 = vadd.f32 %v474_v21, %v375_v2  ;;  %v487_v26 = vadd.f32 %v486_v22, %v385_v4  ;;  %v522_v35 = vmul.f32 %v504_v11, %v490_v24  ;;  %v526_v41 = vmul.f32 %v514_v34, %v494_v29 }
 0x181   : > { %v491_v28 = vmax.f32 %v473_v17, 0.0  ;;  %v495_v33 = vmax.f32 %v485_v20, 0.0  ;;  %v568_v8 = vunpack.c.0.s8 %v567_v7 }
 0x182   : > { %v492_v30 = vmax.f32 %v475_v25, 0.0  ;;  %v496_v37 = vmax.f32 %v487_v26, 0.0 }
 0x183   : > { %v523_v32 = vmul.f32 %v509_v23, %v491_v28  ;;  %v527_v43 = vmul.f32 %v519_v40, %v495_v33  ;;  %v571_v10 = vsub.s32 %v568_v8, %v954_v19 }
 0x184   : > { %v524_v36 = vmul.f32 %v509_v23, %v492_v30  ;;  %v528_v45 = vmul.f32 %v519_v40, %v496_v37 }
 0x185   : > { %v529_v39 = vadd.f32 %v523_v32, %v521_v31 }
 0x186   : > { %v538_v42 = vadd.f32 %v524_v36, %v522_v35 }
 0x187   : > { %v530_v44 = vadd.f32 %v529_v39, %v525_v38 }
 0x188   : > { %v539_v46 = vadd.f32 %v538_v42, %v526_v41 }
 0x189   : > { %v531_v47 = vadd.f32 %v530_v44, %v527_v43 }
 0x18a   : > { %v540_v48 = vadd.f32 %v539_v46, %v528_v45 }
 0x18b   : > { %v532_v49 = vrot.slane %v531_v47, 4 }
 0x18c   : > { %v541_v50 = vrot.slane %v540_v48, 4 }
 0x18d   : > { %v533_v51 = vadd.f32 %v532_v49, %v531_v47 }
 0x18e   : > { %v542_v52 = vadd.f32 %v541_v50, %v540_v48 }
 0x18f   : > { %v534_v53 = vrot.slane %v533_v51, 2 }
 0x190   : > { %v543_v54 = vrot.slane %v542_v52, 2 }
 0x191   : > { %v535_v55 = vadd.f32 %v534_v53, %v533_v51 }
 0x192   : > { %v544_v56 = vadd.f32 %v543_v54, %v542_v52 }
 0x193   : > { %v536_v57 = vrot.slane %v535_v55, 1 }
 0x194   : > { %v545_v59 = vrot.slane %v544_v56, 1 }
 0x195   : > { %v537_v60 = vadd.f32 %v536_v57, %v535_v55 }
 0x196   : > { %v546_v61 = vadd.f32 %v545_v59, %v544_v56 }
 0x197   : > { %v549_v62 = vadd.f32 %v548_v58, %v537_v60 }
 0x198   : > { %v550_v63 = vadd.f32 %v548_v58, %v546_v61 }
 0x199   : > { %v670_v0 = vmul.f32 -1.442695, %v549_v62 }
 0x19a   : > { %v671_v1 = vmul.f32 -1.442695, %v550_v63 }
 0x19b   : > { %734 = vpow2.f32 %v670_v0 }
 0x19c   : > { %736 = vpow2.f32 %v671_v1 }
 0x1a5   : > { %v735_v2 = vpop.eup %734 }
 0x1a6   : > { %v737_v3 = vpop.eup %736  ;;  %v557_v4 = vadd.f32 1.0, %v735_v2 }
 0x1a7   : > { %v558_v5 = vadd.f32 1.0, %v737_v3 }
 0x1a8   : > { %738 = vrcp.f32 %v557_v4 }
 0x1a9   : > { %740 = vrcp.f32 %v558_v5 }
 0x1b2   : > { %v739_v9 = vpop.eup %738 }
 0x1b3   : > { %v741_v11 = vpop.eup %740 }
 0x1b4   : > { %v565_v12 = vcombine.low %v739_v9, %v741_v11 }
 0x1b6   : > { %v572_v13 = vrot.slane %v565_v12, %v571_v10 }
 0x1b8   : > { %v579_v14 = vrot.slane %v572_v13, %v571_v10 }
 0x1ba   : > { %585 = vst.msk [vmem:[%s270_s18] sm:$0x3] %vm583_vm1, %v579_v14 }
 0x1bb   : > { %755 = shalt.err (!%p752_p3)
}
 0x1bc   : > { %s756_s9 = scalar_lea.hbm %s982_s22, 32  ;;  %s760_s15 = scalar_lea.hbm %s1031_s7, 96 }
 0x1bd   : > { %p757_p4 = scmp.ne.s32.totalorder %s982_s22, %s756_s9  ;;  %p761_p9 = scmp.lt.u32.totalorder %s982_s22, %s1031_s7 }
 0x1be   : > { %p762_p10 = scmp.lt.u32.totalorder %s760_s15, %s756_s9  ;;  %p764_p12 = scmp.lt.u32.totalorder %s756_s9, %s982_s22 }
 0x1bf   : > { %p758_p7 = pnand %p757_p4, %p891_p5 }
 0x1c0   : > { %p763_p11 = por %p762_p10, %p761_p9 }
 0x1c1   : > { %p759_p8 = pneg %p758_p7 }
 0x1c2   : > { %p765_p13 = por %p764_p12, %p763_p11 }
 0x1c4   : > { %p766_p0 = pnand %p765_p13, %p759_p8 }
 0x1c6   : > { %769 = shalt.err (!%p766_p0)
}
 0x1c7   : > { %690 = dma.vmem_to_hbm [thread:$0]  (%p891_p5), %s984_s19, 32, %s982_s22, %s587_s23  }
 0x1c8 PF: > { %p696_p1 = scmp.ge.s32.totalorder %s804_s29, 2  ;;  %s613_s18 = sand.u32 1, %s792_s26  }
 0x1c9   : > { %s614_s20 = scalar_lea.sflag [#allocation4], %s613_s18 }
 0x1ca   : > { %p693_p2 = pnand %p696_p1, %p895_p6 }
 0x1cc   : > { %787 = dma.done.wait (!%p693_p2), %s614_s20, 32  }
 0x1cd   : > { %789 = vsyncadd (!%p693_p2), %s614_s20, 4294967264  ;;  %p18_p3 = scmp.ge.s32.totalorder %s878_s8, 5   ;;  %s1034_s26 = smov %s796_s27 }
 0x1ce   : > { %s1035_s27 = smov %s800_s28  ;;  %s1036_s28 = smov %s889_s11 }
 0x1cf   : > { %s1037_s29 = smov %s878_s8  ;;  %20 = sbr.rel (!%p18_p3) target bundleno = 5 (0x5), region = 83 }
 0x1d6   :  { %619 = vsyncpa [#allocation4], 1 }
 0x1d7   :  { %621 = vsyncpa [#allocation4 + $0x1], 1 }

</bundles_post_ra>
